<compile_context>
chip_gen: v5e
topology: v5e:2x2
jax: 0.10.0
libtpu: 0.0.40
codegen_flags: <defaults>
</compile_context>

<pallas_src>
import math

import jax
import jax.numpy as jnp
from jax.experimental import pallas as pl
from jax.experimental.pallas import tpu as pltpu


def _round_up(x, m):
    return ((x + m - 1) // m) * m


def _sinusoidal_kernel(time_ref, table_ref, out_ref):
    # time_ref : (TB, 1)  f32   -- timestep per row
    # table_ref: (2, W)   f32   -- row 0: frequencies, row 1: phases (0 / pi/2)
    # out_ref  : (TB, W)        -- one fused sin, single lane-dense store
    t = time_ref[...]                     # (TB, 1)
    tab = table_ref[...]                  # (2, W)
    f = tab[0:1, :]                       # (1, W)
    p = tab[1:2, :]                       # (1, W)
    args = t * f + p                      # (TB, W) broadcast on VPU
    out_ref[...] = jnp.sin(args).astype(out_ref.dtype)   # EUP + unmasked vst


def _freq_table(dim):
    half = dim // 2
    scale = math.log(10000.0) / (half - 1)
    return jnp.exp(jnp.arange(half, dtype=jnp.float32) * -scale)       # (half,)


def _jnp_reference(time, dim, out_dtype):
    # Pure-jnp mirror of the PyTorch forward (sin/cos concat + odd pad).
    freqs = _freq_table(dim)
    args = time.astype(jnp.float32)[:, None] * freqs[None, :]
    emb = jnp.concatenate([jnp.sin(args), jnp.cos(args)], axis=-1)
    if dim % 2 == 1:
        emb = jnp.pad(emb, ((0, 0), (0, 1)))
    return emb.astype(out_dtype)


def sinusoidal_position_embeddings(time, dim, *, out_dtype=jnp.float32,
                                   force_pallas=False):
    """JAX/Pallas equivalent of SinusoidalPositionEmbeddings.forward.

    time: array of shape [B] (or [B, 1], which gets squeezed), float/int dtype.
    Returns: array of shape [B, dim] in `out_dtype` (default float32).
    """
    time = jnp.asarray(time)
    if time.ndim > 1:
        time = jnp.squeeze(time, axis=-1)
    if dim < 4:
        # half_dim - 1 == 0 would divide by zero (same flaw as the reference).
        raise ValueError(f"SinusoidalPositionEmbeddings requires dim >= 4, got {dim}")

    B = time.shape[0]
    half = dim // 2
    dtype_bytes = jnp.dtype(out_dtype).itemsize

    # Small-batch dispatch: for tiny outputs the pallas_call launch, the
    # zero-padded copy of `time`, and the output slice dominate; a plain jnp
    # expression fuses into the downstream time-MLP for near-zero cost.
    if not force_pallas and B * dim * dtype_bytes < (2 << 20):
        return _jnp_reference(time, dim, out_dtype)

    # ---- Lane-dense padded width: stores are full tiles, never masked. ----
    W = _round_up(dim, 128)
    freqs = _freq_table(dim)
    # Merged resident table: row 0 = [freqs, freqs, 0-pad], row 1 = phases.
    # Lanes >= 2*half (odd-dim pad column + alignment padding) have
    # freq = 0, phase = 0  ->  sin(0) = 0, matching F.pad.
    table = jnp.zeros((2, W), jnp.float32)
    table = table.at[0, :half].set(freqs).at[0, half:2 * half].set(freqs)
    table = table.at[1, half:2 * half].set(jnp.float32(math.pi / 2.0))

    # ---- Row tile sizing (review item 1/2/3). ----
    # Native sublane count of the output dtype so packed stores stay full.
    sublane = {4: 8, 2: 16, 1: 32}.get(dtype_bytes, 8)
    # VMEM footprint per row: output row (W * dtype_bytes) + time row, which
    # lane-pads to 128 f32 lanes in VMEM (512 B) regardless of its width of 1.
    per_row_vmem = W * dtype_bytes + 512
    # Double-buffered working set <= ~20 MiB: comfortably inside the 32 MiB
    # scoped VMEM limit we request below (v7x scoped default; raised from
    # v5e's 16 MiB default), with room for the table and pipeline overhead.
    budget = 20 << 20
    row_cap = max(sublane, (budget // (2 * per_row_vmem)) // sublane * sublane)
    TB = min(_round_up(B, sublane), row_cap)
    B_pad = _round_up(B, TB)

    if B_pad == B:
        time_2d = time.astype(jnp.float32).reshape(B, 1)
    else:
        time_2d = jnp.zeros((B_pad, 1), jnp.float32)
        time_2d = time_2d.at[:B, 0].set(time.astype(jnp.float32))

    cost = pl.CostEstimate(
        flops=2 * B_pad * W,
        transcendentals=B_pad * W,
        bytes_accessed=B_pad * W * dtype_bytes + B_pad * 4 + 2 * W * 4,
    )

    out = pl.pallas_call(
        _sinusoidal_kernel,
        out_shape=jax.ShapeDtypeStruct((B_pad, W), out_dtype),
        grid=(B_pad // TB,),
        in_specs=[
            pl.BlockSpec((TB, 1), lambda i: (i, 0)),   # time rows, tiled over B
            pl.BlockSpec((2, W), lambda i: (0, 0)),    # freq/phase table, resident
        ],
        out_specs=pl.BlockSpec((TB, W), lambda i: (i, 0)),
        compiler_params=pltpu.CompilerParams(
            # "parallel" lets the row axis shard across both TensorCores on
            # v7x (no-op on v5e/v6e).  If profiling shows a single TC busy on
            # v7x, switch to (pltpu.CORE_PARALLEL,) per the perf review.
            dimension_semantics=("parallel",),
            vmem_limit_bytes=32 << 20,
        ),
        cost_estimate=cost,
    )(time_2d, table)

    # No-pad fast path: avoid a post-kernel slice that would re-read/re-write
    # the whole embedding in HBM when the launch shape already matches.
    if B_pad == B and W == dim:
        return out
    return out[:B, :dim]


if __name__ == "__main__":
    key = jax.random.PRNGKey(0)

    # Case 1: small even dim, Pallas path forced (small-B dispatch would
    # otherwise route this to the jnp path).
    B, dim = 8, 32
    time = jax.random.randint(key, (B,), 0, 1000).astype(jnp.float32)
    out = jax.block_until_ready(
        sinusoidal_position_embeddings(time, dim, force_pallas=True))
    ref = _jnp_reference(time, dim, jnp.float32)
    assert out.shape == (B, dim), out.shape
    assert jnp.allclose(out, ref, atol=1e-4, rtol=1e-5), "mismatch (even dim, pallas)"

    # Case 2: odd dim and B not a multiple of 8 (exercises pad/tiling paths).
    B2, dim2 = 10, 33
    time2 = jax.random.randint(jax.random.PRNGKey(1), (B2,), 0, 1000).astype(jnp.float32)
    out2 = jax.block_until_ready(
        sinusoidal_position_embeddings(time2, dim2, force_pallas=True))
    ref2 = _jnp_reference(time2, dim2, jnp.float32)
    assert out2.shape == (B2, dim2), out2.shape
    assert jnp.allclose(out2, ref2, atol=1e-4, rtol=1e-5), "mismatch (odd dim, pallas)"

    # Case 3: dim a multiple of 128 and B a multiple of the sublane count ->
    # no-pad fast path (kernel output returned directly), bf16 output.
    B3, dim3 = 16, 128
    time3 = jax.random.randint(jax.random.PRNGKey(2), (B3,), 0, 1000).astype(jnp.float32)
    out3 = jax.block_until_ready(
        sinusoidal_position_embeddings(time3, dim3, out_dtype=jnp.bfloat16,
                                       force_pallas=True))
    ref3 = _jnp_reference(time3, dim3, jnp.bfloat16)
    assert out3.shape == (B3, dim3), out3.shape
    assert jnp.allclose(out3.astype(jnp.float32), ref3.astype(jnp.float32),
                        atol=2e-2, rtol=2e-2), "mismatch (bf16, no-pad path)"

    # Case 4: default dispatch at small batch routes to the fused jnp path.
    out4 = jax.block_until_ready(sinusoidal_position_embeddings(time, dim))
    assert jnp.allclose(out4, ref, atol=1e-5, rtol=1e-5), "mismatch (small-B dispatch)"

    print("KERNEL_OK")
</pallas_src>

<mosaic_0001>
module attributes {stable_mosaic.version = 11 : i64} {
  func.func @_sinusoidal_kernel(%arg0: i32, %arg1: memref<8x1xf32, #tpu.memory_space<vmem>>, %arg2: memref<2x128xf32, #tpu.memory_space<vmem>>, %arg3: memref<8x128xf32, #tpu.memory_space<vmem>>) attributes {dimension_semantics = [#tpu.dimension_semantics<parallel>], iteration_bounds = array<i64: 1>, scalar_prefetch = 0 : i64, scratch_operands = 0 : i64, tpu.core_type = #tpu.core_type<tc>, window_params = [{transform_indices = @transform_0, window_bounds = array<i64: 8, 1>}, {pipeline_mode = #tpu.pipeline_mode<synchronous>, transform_indices = @transform_1, window_bounds = array<i64: 2, 128>}, {transform_indices = @transform_2, window_bounds = array<i64: 8, 128>}]} {
    %c0 = arith.constant 0 : index
    %c0_0 = arith.constant 0 : index
    %0 = vector.load %arg1[%c0, %c0_0] : memref<8x1xf32, #tpu.memory_space<vmem>>, vector<8x1xf32>
    %c0_1 = arith.constant 0 : index
    %c0_2 = arith.constant 0 : index
    %1 = vector.load %arg2[%c0_1, %c0_2] : memref<2x128xf32, #tpu.memory_space<vmem>>, vector<2x128xf32>
    %2 = vector.extract_strided_slice %1 {offsets = [0, 0], sizes = [1, 128], strides = [1, 1]} : vector<2x128xf32> to vector<1x128xf32>
    %3 = vector.extract_strided_slice %1 {offsets = [1, 0], sizes = [1, 128], strides = [1, 1]} : vector<2x128xf32> to vector<1x128xf32>
    %4 = vector.broadcast %0 : vector<8x1xf32> to vector<8x128xf32>
    %5 = vector.broadcast %2 : vector<1x128xf32> to vector<8x128xf32>
    %6 = arith.mulf %4, %5 : vector<8x128xf32>
    %7 = vector.broadcast %3 : vector<1x128xf32> to vector<8x128xf32>
    %8 = arith.addf %6, %7 : vector<8x128xf32>
    %9 = math.sin %8 : vector<8x128xf32>
    %c0_3 = arith.constant 0 : index
    %c0_4 = arith.constant 0 : index
    %10 = vector.load %arg3[%c0_3, %c0_4] : memref<8x128xf32, #tpu.memory_space<vmem>>, vector<8x128xf32>
    tpu.vector_store %arg3[%c0_3, %c0_4], %9 {strides = array<i32>} : memref<8x128xf32, #tpu.memory_space<vmem>>, vector<8x128xf32>,
    return
  }
  func.func @transform_0(%arg0: i32) -> (i32, i32) {
    %c0_i32 = arith.constant 0 : i32
    %c0_i32_0 = arith.constant 0 : i32
    return %arg0, %c0_i32 : i32, i32
  }
  func.func @transform_1(%arg0: i32) -> (i32, i32) {
    %c0_i32 = arith.constant 0 : i32
    %c0_i32_0 = arith.constant 0 : i32
    %c0_i32_1 = arith.constant 0 : i32
    return %c0_i32, %c0_i32_0 : i32, i32
  }
  func.func @transform_2(%arg0: i32) -> (i32, i32) {
    %c0_i32 = arith.constant 0 : i32
    %c0_i32_0 = arith.constant 0 : i32
    return %arg0, %c0_i32 : i32, i32
  }
}

</mosaic_0001>

<bundles_post_ra>
// kernel: tpu_custom_call.1
= control target key start
LH: loop header
LB: loop body
LE: loop exit
PB: predicated region body
PF: predicated region fallthrough
CT: control target
= control target key end

     0   :  { %v233_v1 = vmov 0   ;;  %s316_s0 = inlined_call_operand.vmem [shape: f32[8,1], index: 0, kind: input, shape index: {}]   ;;  %s317_s1 = inlined_call_operand.vmem [shape: f32[2,128], index: 1, kind: input, shape index: {}]   ;;  %s318_s2 = inlined_call_operand.hbm [shape: f32[8,128], index: 2, kind: output, shape index: {}]  }
   0x1   :  { %v12_v0 = vld [vmem:[%s316_s0] sm:$0xff]  ;;  %206 = vset.pattern.permute.xlu0 %v233_v1 }
   0x2   :  { %16 = vperm.xlu0 %206, %v12_v0  }
   0x3   :  { %7 = vsyncpa [#allocation3], 0  ;;  %v13_v2 = vld [vmem:[%s317_s1] sm:$0x3]  ;;  %v234_v19 = vmov 683565275  }
   0x4   :  { %v19_v3 = vperm.slane %v13_v2, 0  ;;  %v21_v4 = vperm.slane %v13_v2, 1  ;;  %v235_v21 = vmov 2475754826   ;;  %v236_v23 = vmov 2131351028  }
   0x5   :  { %v237_v25 = vmov 2102212464   ;;  %v238_v30 = vmov 920167782   ;;  %v239_v33 = vmov 1326507024  }
   0x6   :  { %s240_s0 = smov [#allocation2]   ;;  %s186_s15 = sshll.u32 %s318_s2, 4  ;;  %s187_s15 = int_to_ptr.hbm [resolvable:$true] %s186_s15 }
   0x7   :  { %s184_s1 = sshll.u32 %s240_s0, 4  ;;  %s185_s1 = int_to_ptr.vmem [resolvable:$true] %s184_s1 }
  0x74   :  { %v17_v5 = vpop.permute.xlu0 %16 }
  0x75   :  { %v20_v6 = vmul.f32 %v19_v3, %v17_v5 }
  0x77   :  { %v263_v7 = vadd.f32 %v21_v4, %v20_v6 }
  0x79   :  { %v26_v8 = vand.u32 2139095040, %v263_v7  ;;  %v23_v10 = vand.u32 2147483647, %v263_v7  ;;  %vm25_vm12 = vcmp.lt.s32.totalorder %v263_v7, 0 }
  0x7b   :  { %v27_v9 = vshrl.u32 %v26_v8, 23  ;;  %v30_v13 = vand.u32 8388607, %v23_v10  ;;  %vm24_vm13 = vcmp.le.f32.partialorder %v23_v10, 0.7853982 }
  0x7d   :  { %v195_v11 = vadd.s32 4294967169, %v27_v9  ;;  %v31_v16 = vor.u32 8388608, %v30_v13 }
  0x7f   :  { %v33_v12 = vadd.s32 1, %v195_v11  ;;  %v271_v35 = vshll.u32 %v31_v16, 8 }
  0x81   :  { %vm34_vm0 = vcmp.gt.s32.totalorder %v33_v12, 0  ;;  %v72_v47 = vand.u32 65535, %v271_v35  ;;  %v73_v49 = vshrl.u32 %v271_v35, 16 }
  0x82   :  { %v35_v14 = vsel %vm34_vm0, %v33_v12, 0 }
  0x83   :  { %v37_v15 = vand.u32 31, %v35_v14  ;;  %v269_v17 = vshrl.u32 %v35_v14, 5 }
  0x85   :  { %v38_v18 = vsub.s32 32, %v37_v15  ;;  %v40_v20 = vshll.u32 %v234_v19, %v37_v15  ;;  %v43_v22 = vshll.u32 %v235_v21, %v37_v15  ;;  %v46_v24 = vshll.u32 %v236_v23, %v37_v15 }
  0x86   :  { %v49_v26 = vshll.u32 %v237_v25, %v37_v15  ;;  %v52_v32 = vshll.u32 %v238_v30, %v37_v15  ;;  %vm55_vm1 = vcmp.lt.s32.totalorder %v269_v17, 1  ;;  %vm58_vm2 = vcmp.lt.s32.totalorder %v269_v17, 4 }
  0x87   :  { %v41_v27 = vshrl.u32 %v235_v21, %v38_v18  ;;  %v44_v28 = vshrl.u32 %v236_v23, %v38_v18  ;;  %v47_v29 = vshrl.u32 %v237_v25, %v38_v18  ;;  %v50_v31 = vshrl.u32 %v238_v30, %v38_v18 }
  0x88   :  { %v53_v34 = vshrl.u32 %v239_v33, %v38_v18  ;;  %vm57_vm3 = vcmp.lt.s32.totalorder %v269_v17, 3  ;;  %vm56_vm4 = vcmp.lt.s32.totalorder %v269_v17, 2  ;;  %v39_v12 = vshrl.u32 %v234_v19, %v38_v18 }
  0x89   :  { %v42_v36 = vor.u32 %v41_v27, %v40_v20  ;;  %v45_v37 = vor.u32 %v44_v28, %v43_v22  ;;  %v48_v38 = vor.u32 %v47_v29, %v46_v24  ;;  %v51_v39 = vor.u32 %v50_v31, %v49_v26 }
  0x8a   :  { %v54_v40 = vor.u32 %v53_v34, %v52_v32 }
  0x8b   :  { %v63_v41 = vsel %vm55_vm1, %v42_v36, %v45_v37  ;;  %v64_v42 = vsel %vm58_vm2, %v51_v39, 920167782  ;;  %v67_v43 = vsel %vm55_vm1, %v45_v37, %v48_v38  ;;  %v60_v8 = vsel %vm58_vm2, %v48_v38, 2102212464 }
  0x8c   :  { %v65_v44 = vsel %vm57_vm3, %v48_v38, %v64_v42  ;;  %v68_v45 = vsel %vm58_vm2, %v54_v40, 1326507024  ;;  %v59_v21 = vsel %vm55_vm1, %v39_v12, %v42_v36  ;;  %v61_v22 = vsel %vm57_vm3, %v45_v37, %v60_v8 }
  0x8d   :  { %v69_v46 = vsel %vm57_vm3, %v51_v39, %v68_v45  ;;  %v66_v48 = vsel %vm56_vm4, %v63_v41, %v65_v44  ;;  %v62_v19 = vsel %vm56_vm4, %v59_v21, %v61_v22  ;;  %vm166_vm1 = vweird.f32 %v263_v7 }
  0x8e   :  { %v70_v50 = vsel %vm56_vm4, %v67_v43, %v69_v46  ;;  %v96_v51 = vand.u32 65535, %v66_v48  ;;  %v97_v52 = vshrl.u32 %v66_v48, 16  ;;  %v116_v31 = vmul.u32 %v271_v35, %v62_v19 }
  0x8f   :  { %v74_v53 = vand.u32 65535, %v70_v50  ;;  %v75_v54 = vshrl.u32 %v70_v50, 16 }
  0x90   :  { %v99_v55 = vmul.u32 %v97_v52, %v72_v47  ;;  %v100_v56 = vmul.u32 %v96_v51, %v73_v49  ;;  %v98_v59 = vmul.u32 %v96_v51, %v72_v47  ;;  %v101_v63 = vmul.u32 %v97_v52, %v73_v49 }
  0x91   :  { %v77_v57 = vmul.u32 %v75_v54, %v72_v47  ;;  %v78_v58 = vmul.u32 %v74_v53, %v73_v49  ;;  %v76_v61 = vmul.u32 %v74_v53, %v72_v47  ;;  %v79_v0 = vmul.u32 %v75_v54, %v73_v49 }
  0x92   :  { %v102_v60 = vshll.u32 %v99_v55, 16  ;;  %v104_v2 = vshll.u32 %v100_v56, 16  ;;  %v103_v16 = vshrl.u32 %v99_v55, 16  ;;  %v105_v25 = vshrl.u32 %v100_v56, 16 }
  0x93   :  { %v80_v62 = vshll.u32 %v77_v57, 16  ;;  %v82_v4 = vshll.u32 %v78_v58, 16  ;;  %v81_v23 = vshrl.u32 %v77_v57, 16  ;;  %v83_v27 = vshrl.u32 %v78_v58, 16 }
  0x94   :  { %vm106_vm5 = vc.u32 %v98_v59, %v102_v60  ;;  %v108_v3 = vadd.s32 %v102_v60, %v98_v59 }
  0x95   :  { %vm84_vm6 = vc.u32 %v76_v61, %v80_v62  ;;  %v86_v5 = vadd.s32 %v80_v62, %v76_v61  ;;  %v107_v6 = vsel %vm106_vm5, 1, %v233_v1 }
  0x96   :  { %v85_v9 = vsel %vm84_vm6, 1, %v233_v1  ;;  %v109_v11 = vadd.s32 %v107_v6, %v101_v63  ;;  %vm110_vm7 = vc.u32 %v108_v3, %v104_v2 }
  0x97   :  { %v87_v13 = vadd.s32 %v85_v9, %v79_v0  ;;  %vm88_vm8 = vc.u32 %v86_v5, %v82_v4  ;;  %v111_v14 = vsel %vm110_vm7, 1, %v233_v1 }
  0x98   :  { %v89_v15 = vsel %vm88_vm8, 1, %v233_v1  ;;  %v113_v20 = vadd.s32 %v111_v14, %v109_v11  ;;  %v112_v1 = vadd.s32 %v108_v3, %v104_v2 }
  0x99   :  { %v91_v24 = vadd.s32 %v89_v15, %v87_v13 }
  0x9a   :  { %v114_v26 = vadd.s32 %v113_v20, %v103_v16 }
  0x9b   :  { %v92_v18 = vadd.s32 %v91_v24, %v81_v23 }
  0x9c   :  { %v115_v28 = vadd.s32 %v114_v26, %v105_v25 }
  0x9d   :  { %v93_v29 = vadd.s32 %v92_v18, %v83_v27 }
  0x9e   :  { %v119_v30 = vadd.s32 1, %v115_v28 }
  0x9f   :  { %vm118_vm9 = vc.u32 %v93_v29, %v112_v1  ;;  %v117_v43 = vadd.s32 %v112_v1, %v93_v29 }
  0xa0   :  { %v120_v32 = vsel %vm118_vm9, %v119_v30, %v115_v28 }
  0xa1   :  { %v121_v33 = vadd.s32 %v120_v32, %v116_v31 }
  0xa3   :  { %v122_v34 = vadd.s32 536870912, %v121_v33 }
  0xa5   :  { %v123_v36 = vshrl.u32 %v122_v34, 30 }
  0xa7   :  { %v124_v37 = vshll.u32 %v123_v36, 30  ;;  %v147_v56 = vsub.s32 4, %v123_v36 }
  0xa9   :  { %v125_v38 = vsub.s32 %v121_v33, %v124_v37  ;;  %v148_v61 = vsel %vm25_vm12, %v147_v56, %v123_v36 }
  0xaa   :  { %v150_v0 = vsel %vm24_vm13, 0, %v148_v61 }
  0xab   :  { %vm126_vm10 = vcmp.lt.s32.totalorder %v125_v38, 0  ;;  %v127_v39 = vsub.s32 0, %v125_v38  ;;  %v167_v6 = vadd.s32 3, %v150_v0 }
  0xad   :  { %v128_v40 = vsel %vm126_vm10, %v127_v39, %v125_v38  ;;  %v168_v12 = vand.u32 3, %v167_v6 }
  0xae   :  { %v129_v41 = vclz %v128_v40 }
  0xaf   :  { %vm170_vm14 = vcmp.eq.s32.totalorder %v168_v12, 0  ;;  %vm173_vm15 = vcmp.eq.s32.totalorder %v168_v12, 2  ;;  %vm169_vm0 = vcmp.lt.s32.totalorder %v168_v12, 2 }
  0xb0   :  { %v196_v42 = vadd.s32 4294967294, %v129_v41 }
  0xb2   :  { %vm197_vm11 = vcmp.lt.s32.totalorder %v196_v42, 0 }
  0xb3   :  { %v132_v17 = vsel %vm197_vm11, 0, %v196_v42 }
  0xb4   :  { %v133_v44 = vsub.s32 32, %v132_v17  ;;  %v137_v45 = vsub.s32 4294967266, %v132_v17  ;;  %v134_v46 = vshll.u32 %v125_v38, %v132_v17 }
  0xb6   :  { %v135_v47 = vshrl.u32 %v117_v43, %v133_v44  ;;  %v138_v35 = vadd.s32 127, %v137_v45 }
  0xb8   :  { %v136_v48 = vor.u32 %v135_v47, %v134_v46  ;;  %v139_v49 = vshll.u32 %v138_v35, 23 }
  0xba   :  { %v140_v50 = vor.u32 4788187, %v139_v49  ;;  %v143_v52 = vcvt.s32.f32 %v136_v48 }
  0xbc   :  { %v141_v51 = vand.u32 2147483647, %v140_v50 }
  0xbe   :  { %v144_v53 = vmul.f32 %v143_v52, %v141_v51 }
  0xc0   :  { %v145_v54 = vxor.u32 2147483648, %v144_v53 }
  0xc2   :  { %v146_v55 = vsel %vm25_vm12, %v145_v54, %v144_v53 }
  0xc3   :  { %v149_v57 = vsel %vm24_vm13, %v263_v7, %v146_v55 }
  0xc4   :  { %v151_v58 = vmul.f32 %v149_v57, %v149_v57 }
  0xc6   :  { %v152_v59 = vmul.f32 -0.001358992, %v151_v58  ;;  %v159_v60 = vmul.f32 -0.00019511016, %v151_v58 }
  0xc8   :  { %v153_v62 = vadd.f32 0.041655596, %v152_v59  ;;  %v160_v63 = vadd.f32 0.008332121, %v159_v60 }
  0xca   :  { %v154_v2 = vmul.f32 %v153_v62, %v151_v58  ;;  %v161_v3 = vmul.f32 %v160_v63, %v151_v58 }
  0xcc   :  { %v155_v4 = vadd.f32 -0.4999988, %v154_v2  ;;  %v162_v5 = vadd.f32 -0.16666654, %v161_v3 }
  0xce   :  { %v156_v8 = vmul.f32 %v155_v4, %v151_v58  ;;  %v163_v9 = vmul.f32 %v162_v5, %v151_v58 }
  0xd0   :  { %v157_v11 = vadd.f32 1.0, %v156_v8  ;;  %v164_v10 = vadd.f32 1.0, %v163_v9 }
  0xd2   :  { %v165_v13 = vmul.f32 %v164_v10, %v149_v57  ;;  %v174_v14 = vxor.u32 2147483648, %v157_v11 }
  0xd4   :  { %v171_v15 = vxor.u32 2147483648, %v165_v13  ;;  %v175_v20 = vsel %vm173_vm15, %v174_v14, %v165_v13 }
  0xd6   :  { %v172_v16 = vsel %vm170_vm14, %v157_v11, %v171_v15 }
  0xd7   :  { %v176_v21 = vsel %vm169_vm0, %v172_v16, %v175_v20 }
  0xd8   :  { %v177_v22 = vsel %vm166_vm1, nan, %v176_v21 }
  0xd9   :  { %178 = vst [vmem:[#allocation2] sm:$0xff] %v177_v22 }
  0xda   :  { %189 = dma.vmem_to_hbm [thread:$0]  %s185_s1, 128, %s187_s15, [#allocation3]  }
  0xdb   :  { %231 = dma.done.wait [#allocation3], 128  }
  0xdc   :  { %232 = vsyncadd [#allocation3], 4294967168 }
  0xdd   :  { %194 = vsyncpa [#allocation3], 1 }

</bundles_post_ra>
